<compile_context>
chip_gen: v7x
topology: tpu7x:2x2x1
jax: 0.10.0
libtpu: 0.0.40
codegen_flags: <defaults>
</compile_context>

<pallas_src>
import jax
import jax.numpy as jnp
from jax import lax
from jax.experimental import pallas as pl
from jax.experimental.pallas import tpu as pltpu


def motion_head_kernel(p_ref, w1_ref, b1_ref, w2_ref, b2_ref, o_ref):
    # p_ref : (K, MB)   im2col patches, K = 9*Cin, pixels in the lane axis
    # w1_ref: (C, K)    conv1 weights with BN scale folded in
    # b1_ref: (C, 1)    conv1 bias with BN folded in
    # w2_ref: (2, C)    conv2 (1x1) weights
    # b2_ref: (2, 1)    conv2 bias
    # o_ref : (2, MB)   output slab (lane-dense)
    h = jnp.dot(w1_ref[...], p_ref[...], preferred_element_type=jnp.float32)
    h = jnp.maximum(h + b1_ref[...], 0.0)
    out = jnp.dot(w2_ref[...], h, preferred_element_type=jnp.float32)
    out = out + b2_ref[...]
    o_ref[...] = out.astype(o_ref.dtype)


def motion_head_forward(x_nchw, params, block_m=256):
    """x_nchw: (N, Cin, H, W) float32. Returns (N, H, W, 2) float32 (NHWC)."""
    N, Cin, H, W = x_nchw.shape
    w1 = params["w1"]            # (3, 3, Cin, C)  HWIO
    b1 = params["b1"]            # (C,)
    gamma = params["bn_gamma"]   # (C,)
    beta = params["bn_beta"]     # (C,)
    mean = params["bn_mean"]     # (C,)
    var = params["bn_var"]       # (C,)
    w2 = params["w2"]            # (C, 2)
    b2 = params["b2"]            # (2,)
    eps = 1e-5

    C = w1.shape[3]
    K = 9 * Cin

    # Fold BatchNorm (eval mode) + conv1 bias into the conv weights:
    #   (conv(x, w1) + b1 - mean) / sqrt(var+eps) * gamma + beta
    # = conv(x, w1 * scale) + (b1 * scale + shift)
    scale = gamma / jnp.sqrt(var + eps)
    shift = beta - mean * scale
    w1f = (w1 * scale[None, None, None, :]).reshape(K, C).T   # (C, K)
    b1f = (b1 * scale + shift).reshape(C, 1)                  # (C, 1)
    w2t = w2.T                                                # (2, C)
    b2c = b2.reshape(2, 1)                                    # (2, 1)

    # Layout plumbing in XLA: NCHW -> NHWC, zero pad for SAME 3x3 conv, and
    # build the transposed im2col matrix (K, M) with pixels lane-dense.
    x_nhwc = jnp.transpose(x_nchw, (0, 2, 3, 1))
    xp = jnp.pad(x_nhwc, ((0, 0), (1, 1), (1, 1), (0, 0)))
    taps = [xp[:, dy:dy + H, dx:dx + W, :]
            for dy in range(3) for dx in range(3)]
    patches = jnp.concatenate(taps, axis=-1)                  # (N, H, W, K)
    M = N * H * W
    patches = patches.reshape(M, K).T                         # (K, M)

    # Tile the flattened pixel axis; pad to a multiple of the block size.
    MB = min(block_m, max(128, -(-M // 128) * 128))
    M_pad = -(-M // MB) * MB
    if M_pad != M:
        patches = jnp.pad(patches, ((0, 0), (0, M_pad - M)))

    out = pl.pallas_call(
        motion_head_kernel,
        out_shape=jax.ShapeDtypeStruct((2, M_pad), jnp.float32),
        grid_spec=pltpu.PrefetchScalarGridSpec(
            num_scalar_prefetch=0,
            grid=(M_pad // MB,),
            in_specs=[
                pl.BlockSpec((K, MB), lambda m: (0, m)),
                pl.BlockSpec((C, K), lambda m: (0, 0)),
                pl.BlockSpec((C, 1), lambda m: (0, 0)),
                pl.BlockSpec((2, C), lambda m: (0, 0)),
                pl.BlockSpec((2, 1), lambda m: (0, 0)),
            ],
            out_specs=pl.BlockSpec((2, MB), lambda m: (0, m)),
        ),
        compiler_params=pltpu.CompilerParams(
            dimension_semantics=("parallel",),
            vmem_limit_bytes=32 * 1024 * 1024,
        ),
    )(patches, w1f, b1f, w2t, b2c)

    # (2, M) -> (N, H, W, 2): exactly the permuted NHWC output PyTorch returns.
    out = out[:, :M].T.reshape(N, H, W, 2)
    return out


def reference_forward(x_nchw, params):
    """Pure-JAX reference with the same (eval-mode BN) semantics."""
    eps = 1e-5
    x = jnp.transpose(x_nchw, (0, 2, 3, 1))
    y = lax.conv_general_dilated(
        x, params["w1"], window_strides=(1, 1), padding="SAME",
        dimension_numbers=("NHWC", "HWIO", "NHWC"))
    y = y + params["b1"]
    y = (y - params["bn_mean"]) / jnp.sqrt(params["bn_var"] + eps)
    y = y * params["bn_gamma"] + params["bn_beta"]
    y = jnp.maximum(y, 0.0)
    y = jnp.einsum("nhwc,cd->nhwd", y, params["w2"]) + params["b2"]
    return y


def init_params(key, in_channels, channels):
    ks = jax.random.split(key, 6)
    w1 = 0.1 * jax.random.normal(ks[0], (3, 3, in_channels, channels),
                                 jnp.float32)
    b1 = 0.01 * jax.random.normal(ks[1], (channels,), jnp.float32)
    w2 = 0.1 * jax.random.normal(ks[2], (channels, 2), jnp.float32)
    b2 = 0.01 * jax.random.normal(ks[3], (2,), jnp.float32)
    bn_gamma = 1.0 + 0.05 * jax.random.normal(ks[4], (channels,), jnp.float32)
    bn_beta = 0.05 * jax.random.normal(ks[5], (channels,), jnp.float32)
    bn_mean = jnp.zeros((channels,), jnp.float32)
    bn_var = jnp.ones((channels,), jnp.float32)
    return dict(w1=w1, b1=b1, w2=w2, b2=b2, bn_gamma=bn_gamma,
                bn_beta=bn_beta, bn_mean=bn_mean, bn_var=bn_var)


if __name__ == "__main__":
    key = jax.random.PRNGKey(0)
    k_x, k_p = jax.random.split(key)

    N, H, W = 2, 16, 16
    in_channels, channels = 4, 32

    # NCHW input, exactly as the PyTorch module would receive it.
    x = jax.random.normal(k_x, (N, in_channels, H, W), jnp.float32)
    params = init_params(k_p, in_channels, channels)

    out = motion_head_forward(x, params)
    out = jax.block_until_ready(out)

    ref = reference_forward(x, params)
    assert out.shape == (N, H, W, 2)
    assert jnp.allclose(out, ref, atol=2e-4, rtol=2e-4), "mismatch vs reference"

    print("KERNEL_OK")
</pallas_src>

<mosaic_0001>
module attributes {stable_mosaic.version = 11 : i64} {
  func.func @motion_head_kernel(%arg0: i32, %arg1: memref<36x256xf32, #tpu.memory_space<vmem>>, %arg2: memref<32x36xf32, #tpu.memory_space<vmem>>, %arg3: memref<32x1xf32, #tpu.memory_space<vmem>>, %arg4: memref<2x32xf32, #tpu.memory_space<vmem>>, %arg5: memref<2x1xf32, #tpu.memory_space<vmem>>, %arg6: memref<2x256xf32, #tpu.memory_space<vmem>>) attributes {dimension_semantics = [#tpu.dimension_semantics<parallel>], iteration_bounds = array<i64: 2>, scalar_prefetch = 0 : i64, scratch_operands = 0 : i64, tpu.core_type = #tpu.core_type<tc>, window_params = [{transform_indices = @transform_0, window_bounds = array<i64: 36, 256>}, {pipeline_mode = #tpu.pipeline_mode<synchronous>, transform_indices = @transform_1, window_bounds = array<i64: 32, 36>}, {pipeline_mode = #tpu.pipeline_mode<synchronous>, transform_indices = @transform_2, window_bounds = array<i64: 32, 1>}, {pipeline_mode = #tpu.pipeline_mode<synchronous>, transform_indices = @transform_3, window_bounds = array<i64: 2, 32>}, {pipeline_mode = #tpu.pipeline_mode<synchronous>, transform_indices = @transform_4, window_bounds = array<i64: 2, 1>}, {transform_indices = @transform_5, window_bounds = array<i64: 2, 256>}]} {
    %c0 = arith.constant 0 : index
    %c0_0 = arith.constant 0 : index
    %0 = vector.load %arg2[%c0, %c0_0] : memref<32x36xf32, #tpu.memory_space<vmem>>, vector<32x36xf32>
    %c0_1 = arith.constant 0 : index
    %c0_2 = arith.constant 0 : index
    %1 = vector.load %arg1[%c0_1, %c0_2] : memref<36x256xf32, #tpu.memory_space<vmem>>, vector<36x256xf32>
    %cst = arith.constant dense<0.000000e+00> : vector<32x256xf32>
    %2 = tpu.matmul %0, %1, %cst {dimension_numbers = #tpu.dot_dimension_numbers<[1], [0], [0], [1], [0, 0, 1, 1], [], []>} : vector<32x36xf32>, vector<36x256xf32>, vector<32x256xf32> -> vector<32x256xf32>
    %c0_3 = arith.constant 0 : index
    %c0_4 = arith.constant 0 : index
    %3 = vector.load %arg3[%c0_3, %c0_4] : memref<32x1xf32, #tpu.memory_space<vmem>>, vector<32x1xf32>
    %4 = vector.broadcast %3 : vector<32x1xf32> to vector<32x256xf32>
    %5 = arith.addf %2, %4 : vector<32x256xf32>
    %cst_5 = arith.constant 0.000000e+00 : f32
    %6 = vector.broadcast %cst_5 : f32 to vector<32x256xf32>
    %7 = arith.maximumf %5, %6 : vector<32x256xf32>
    %c0_6 = arith.constant 0 : index
    %c0_7 = arith.constant 0 : index
    %8 = vector.load %arg4[%c0_6, %c0_7] : memref<2x32xf32, #tpu.memory_space<vmem>>, vector<2x32xf32>
    %cst_8 = arith.constant dense<0.000000e+00> : vector<2x256xf32>
    %9 = tpu.matmul %8, %7, %cst_8 {dimension_numbers = #tpu.dot_dimension_numbers<[1], [0], [0], [1], [0, 0, 1, 1], [], []>} : vector<2x32xf32>, vector<32x256xf32>, vector<2x256xf32> -> vector<2x256xf32>
    %c0_9 = arith.constant 0 : index
    %c0_10 = arith.constant 0 : index
    %10 = vector.load %arg5[%c0_9, %c0_10] : memref<2x1xf32, #tpu.memory_space<vmem>>, vector<2x1xf32>
    %11 = vector.broadcast %10 : vector<2x1xf32> to vector<2x256xf32>
    %12 = arith.addf %9, %11 : vector<2x256xf32>
    %c0_11 = arith.constant 0 : index
    %c0_12 = arith.constant 0 : index
    %13 = vector.load %arg6[%c0_11, %c0_12] : memref<2x256xf32, #tpu.memory_space<vmem>>, vector<2x256xf32>
    tpu.vector_store %arg6[%c0_11, %c0_12], %12 {strides = array<i32>} : memref<2x256xf32, #tpu.memory_space<vmem>>, vector<2x256xf32>,
    return
  }
  func.func @transform_0(%arg0: i32) -> (i32, i32) {
    %c0_i32 = arith.constant 0 : i32
    %c0_i32_0 = arith.constant 0 : i32
    return %c0_i32, %arg0 : i32, i32
  }
  func.func @transform_1(%arg0: i32) -> (i32, i32) {
    %c0_i32 = arith.constant 0 : i32
    %c0_i32_0 = arith.constant 0 : i32
    %c0_i32_1 = arith.constant 0 : i32
    return %c0_i32, %c0_i32_0 : i32, i32
  }
  func.func @transform_2(%arg0: i32) -> (i32, i32) {
    %c0_i32 = arith.constant 0 : i32
    %c0_i32_0 = arith.constant 0 : i32
    %c0_i32_1 = arith.constant 0 : i32
    return %c0_i32, %c0_i32_0 : i32, i32
  }
  func.func @transform_3(%arg0: i32) -> (i32, i32) {
    %c0_i32 = arith.constant 0 : i32
    %c0_i32_0 = arith.constant 0 : i32
    %c0_i32_1 = arith.constant 0 : i32
    return %c0_i32, %c0_i32_0 : i32, i32
  }
  func.func @transform_4(%arg0: i32) -> (i32, i32) {
    %c0_i32 = arith.constant 0 : i32
    %c0_i32_0 = arith.constant 0 : i32
    %c0_i32_1 = arith.constant 0 : i32
    return %c0_i32, %c0_i32_0 : i32, i32
  }
  func.func @transform_5(%arg0: i32) -> (i32, i32) {
    %c0_i32 = arith.constant 0 : i32
    %c0_i32_0 = arith.constant 0 : i32
    return %c0_i32, %arg0 : i32, i32
  }
}

</mosaic_0001>

<bundles_post_ra>
// kernel: tpu_custom_call.1
= control target key start
LH: loop header
LB: loop body
LE: loop exit
PB: predicated region body
PF: predicated region fallthrough
CT: control target
= control target key end

     0   :  { %10 = vsyncpa [#allocation3], 0  ;;  %s1006_s0 = inlined_call_operand.hbm [shape: f32[36,512], index: 0, kind: input, shape index: {}]   ;;  %s1007_s1 = inlined_call_operand.vmem [shape: f32[32,36], index: 1, kind: input, shape index: {}]   ;;  %s1008_s2 = inlined_call_operand.vmem [shape: f32[32,1], index: 2, kind: input, shape index: {}]   ;;  %s1009_s3 = inlined_call_operand.vmem [shape: f32[2,32], index: 3, kind: input, shape index: {}]   ;;  %s1010_s4 = inlined_call_operand.vmem [shape: f32[2,1], index: 4, kind: input, shape index: {}]   ;;  %s1011_s5 = inlined_call_operand.hbm [shape: f32[2,512], index: 5, kind: output, shape index: {}]  }
   0x1   :  { %12 = vsyncpa [#allocation3 + $0x1], 0 }
   0x2   :  { %13 = vsyncpa [#allocation4], 0 }
   0x3   :  { %15 = vsyncpa [#allocation4 + $0x1], 0  ;;  %s807_s18 = smov 0   ;;  %s809_s19 = smov 0  }
   0x4   :  { %s811_s20 = smov 0   ;;  %s813_s21 = smov 0  }
   0x5 LB: > { %s828_s22 = sadd.s32 4294967295, %s768_s21   ;;  %s579_s23 = sadd.s32 4294967294, %s768_s21   ;;  %s768_s21 = sphi %s813_s21, %s1024_s21   ;;  %s764_s20 = sphi %s811_s20, %s1023_s20   ;;  %s760_s19 = sphi %s809_s19, %s1022_s19   ;;  %s756_s18 = sphi %s807_s18, %s1021_s18  }
   0x6   : > { %s832_s24 = sadd.s32 1, %s768_s21   ;;  %s28_s25 = sadd.s32 1, %s764_s20 }
   0x7   : > { %s25_s26 = ssub.s32 %s768_s21, %s832_s24  ;;  %p35_p0 = scmp.ne.s32.totalorder %s764_s20, %s760_s19 }
   0x8   : > { %p26_p1 = scmp.eq.s32.totalorder %s25_s26, 0  ;;  %p36_p2 = scmp.eq.s32.totalorder %s768_s21, 0 }
   0x9   : > { %p41_p3 = scmp.ne.s32.totalorder %s760_s19, %s756_s18  ;;  %p42_p4 = scmp.eq.s32.totalorder %s828_s22, 0 }
   0xa   : > { %s844_s27 = scalar_select %p26_p1, %s764_s20, %s28_s25  }
   0xb   : > { %p37_p5 = por %p36_p2, %p35_p0  ;;  %p846_p6 = por %p42_p4, %p41_p3 }
   0xc   : > { %p149_p7 = scmp.eq.s32.totalorder %s828_s22, 1  ;;  %p155_p8 = scmp.eq.s32.totalorder %s579_s23, 1 }
   0xd   : > { %p631_p10 = scmp.lt.s32.totalorder %s768_s21, 2  ;;  %s187_s6 = sand.u32 1, %s764_s20  }
   0xe   : > { %p853_p11 = por %p149_p7, %p35_p0  ;;  %p857_p12 = por %p155_p8, %p41_p3 }
   0xf   : > { %s599_s7 = sshll.u32 %s768_s21, 8  ;;  %s617_s8 = smul.u32 80, %s187_s6 }
  0x10   : > { %s1014_s29 = scalar_select %p853_p11, 1, 0 }
  0x11   : > { %s1015_s30 = scalar_select %p857_p12, 1, 0 }
  0x12   : > { %s866_s11 = scalar_lea.hbm %s1006_s0, %s599_s7  ;;  %p868_p13 = pnand %p631_p10, %p37_p5 }
  0x13   : > { %s191_s13 = scalar_lea.vmem [#allocation2], %s617_s8  ;;  %s875_s15 = scalar_lea.sflag [#allocation3], %s187_s6 }
  0x14   : > { %s198_s14 = sshll.u32 %s191_s13, 4  ;;  %s672_s16 = scalar_lea.hbm %s866_s11, 1280  ;;  %s872_s14 = int_to_ptr.vmem [resolvable:$true] %s198_s14 }
  0x15   : > { %p673_p1 = scmp.ne.s32.totalorder %s866_s11, %s672_s16  ;;  %p674_p2 = pneg %p868_p13 }
  0x16   : > { %s677_s25 = scalar_lea.hbm %s1006_s0, 2560  ;;  %p678_p5 = scmp.lt.u32.totalorder %s866_s11, %s1006_s0 }
  0x17   : > { %p675_p3 = pnand %p674_p2, %p673_p1  ;;  %p679_p7 = scmp.lt.u32.totalorder %s677_s25, %s672_s16 }
  0x18   : > { %p681_p10 = scmp.lt.u32.totalorder %s672_s16, %s866_s11 }
  0x19   : > { %p676_p4 = pneg %p675_p3  ;;  %p680_p8 = por %p679_p7, %p678_p5 }
  0x1b   : > { %p682_p9 = por %p681_p10, %p680_p8 }
  0x1d   : > { %p683_p0 = pnand %p682_p9, %p676_p4 }
  0x1f   : > { %686 = shalt.err (!%p683_p0)
}
  0x20   : > { %s687_s6 = scalar_lea.vmem %s872_s14, 1280  ;;  %s770_s8 = smov [#allocation2]  }
  0x21   : > { %p688_p1 = scmp.ne.s32.totalorder %s872_s14, %s687_s6  ;;  %s692_s9 = sshll.u32 %s770_s8, 4  ;;  %s693_s9 = int_to_ptr.vmem [resolvable:$false] %s692_s9 }
  0x22   : > { %s694_s10 = scalar_lea.vmem %s693_s9, 2560  ;;  %p695_p11 = scmp.lt.s32.totalorder %s872_s14, %s693_s9 }
  0x23   : > { %p690_p3 = pnand %p688_p1, %p674_p2  ;;  %p696_p5 = scmp.lt.s32.totalorder %s694_s10, %s687_s6 }
  0x25   : > { %p691_p12 = pneg %p690_p3  ;;  %p697_p7 = por %p696_p5, %p695_p11 }
  0x27   : > { %p698_p8 = pnand %p697_p7, %p691_p12 }
  0x29   : > { %701 = shalt.err (!%p698_p8)
}
  0x2a   : > { %s771_s13 = smov 512   ;;  %s772_s16 = smov 256  }
  0x2b   : > { %s773_s17 = smov 16   ;;  %p206_p9 = scmp.lt.s32.totalorder %s768_s21, 3 }
  0x2c   : > { %626 = dma.hbm_to_vmem [thread:$0]  (!%p868_p13), %s866_s11, 1280, %s872_s14, %s875_s15, %s771_s13, %s772_s16, %s773_s17  }
  0x2d   : > { %p1017_p0 = scmp.ge.s32.totalorder %s768_s21, 1 }
  0x2f   : > { %p207_p2 = pnand %p1017_p0, %p206_p9 }
  0x30   : > { %s907_s23 = sand.u32 (!%p207_p2), 1, %s760_s19  }
  0x31   : > { %210 = sbr.rel (%p207_p2) target bundleno = 536 (0x218), region = 40  ;;  %s213_s26 = scalar_lea.sflag (!%p207_p2), [#allocation3], %s907_s23 }
  0x32   : > { %s618_s25 = smul.u32 (!%p207_p2), 80, %s907_s23 }
  0x34   : > { %s911_s7 = scalar_lea.vmem (!%p207_p2), [#allocation2], %s618_s25 }
  0x38   : > { %747 = dma.done.wait (%p846_p6), %s213_s26, 1280  }
  0x39   : > { %749 = vsyncadd (%p846_p6), %s213_s26, 4294966016  ;;  %v774_v0 = vmov 0.0   ;;  %v775_v1 = vmov 0   ;;  %v250_v2 = vld [vmem:[%s911_s7 + $0x8] sm:$0xff]  ;;  %v252_v3 = vld [vmem:[%s911_s7 + $0x18] sm:$0xff]  ;;  %vm296_vm0 = vcmask 1043456  }
  0x3a   : > { %367 = vmatprep.mubr.f32.mxu0 %v774_v0  ;;  %670 = vset.pattern.permute.xlu0 %v775_v1  ;;  %v249_v4 = vld [vmem:[%s911_s7] sm:$0xff]  ;;  %v601_v5 = vpack.c.bf16 %v252_v3, %v250_v2  ;;  %v251_v6 = vld [vmem:[%s911_s7 + $0x10] sm:$0xff]  ;;  %v254_v7 = vld [vmem:[%s911_s7 + $0x28] sm:$0xff]  ;;  %vm283_vm1 = vcmask 293888   ;;  %vm407_vm2 = vcmask 261120   ;;  %s585_s6 = sshll.u32 %s907_s23, 2 }
  0x3b   : > { %671 = vset.pattern.permute.xlu1 %v775_v1  ;;  %475 = vmatprep.mubr.f32.mxu1 %v774_v0  ;;  %v256_v8 = vld [vmem:[%s911_s7 + $0x38] sm:$0xff]  ;;  %v603_v9 = vpack.c.bf16 %v251_v6, %v249_v4  ;;  %v253_v11 = vld [vmem:[%s911_s7 + $0x20] sm:$0xff]  ;;  %v255_v12 = vld [vmem:[%s911_s7 + $0x30] sm:$0xff]  ;;  %s600_s8 = sshll.u32 %s828_s22, 6  ;;  %s242_s9 = scalar_lea.vmem [#allocation5], %s585_s6 }
  0x3c   : > { %v605_v10 = vpack.c.bf16 %v256_v8, %v254_v7  ;;  %602 = vmatprep.subr.bf16.mxu0 %v601_v5  ;;  %v607_v13 = vpack.c.bf16 %v255_v12, %v253_v11  ;;  %v259_v14 = vld [vmem:[%s1008_s2] sm:$0xff]  ;;  %v261_v15 = vld [vmem:[%s1008_s2 + $0x10] sm:$0xff]  ;;  %v258_v16 = vld [vmem:[%s911_s7 + $0x48] sm:$0xf]  ;;  %s509_s10 = sshll.u32 %s242_s9, 4  ;;  %s962_s17 = scalar_lea.hbm %s1011_s5, %s600_s8  ;;  %s964_s10 = int_to_ptr.vmem [resolvable:$true] %s509_s10 }
  0x3d   : > { %604 = vmatpush1.bf16.msra.mxu0 %v603_v9  ;;  %265 = vperm.xlu0 %670, %v259_v14   ;;  %v260_v17 = vld [vmem:[%s1008_s2 + $0x8] sm:$0xff]  ;;  %v262_v18 = vld [vmem:[%s1008_s2 + $0x18] sm:$0xff]  ;;  %v257_v19 = vld [vmem:[%s911_s7 + $0x40] sm:$0xf]  ;;  %s495_s25 = scalar_lea.sflag [#allocation4], %s907_s23  ;;  %s702_s26 = scalar_lea.vmem %s964_s10, 64 }
  0x3e   : > { %606 = vmatprep.subr.bf16.mxu0 %v605_v10  ;;  %275 = vperm.xlu1 %671, %v261_v15   ;;  %v245_v20 = vld [vmem:[%s1007_s1] sm:$0xff]  ;;  %v246_v22 = vld [vmem:[%s1007_s1 + $0x8] sm:$0xff]  ;;  %v247_v23 = vld [vmem:[%s1007_s1 + $0x10] sm:$0xff]  ;;  %p703_p6 = scmp.ne.s32.totalorder %s964_s10, %s702_s26  ;;  %p1018_p11 = scmp.ne.s32.totalorder %s1014_s29, 0 }
  0x3f   : > { %v401_v21 = vld [vmem:[%s1010_s4] sm:$0x3]  ;;  %v248_v24 = vld [vmem:[%s1007_s1 + $0x18] sm:$0xff]  ;;  %s776_s22 = smov [#allocation5]  }
  0x40   : > { %v400_v57 = vld [vmem:[%s1009_s3] sm:$0x3]  ;;  %p704_p12 = pnand %p703_p6, %p1018_p11  ;;  %s706_s7 = sshll.u32 %s776_s22, 4  ;;  %s707_s7 = int_to_ptr.vmem [resolvable:$false] %s706_s7 }
  0x41   : > { %608 = vmatpush1.bf16.msra.mxu0 %v607_v13  ;;  %270 = vperm.xlu0 %670, %v260_v17   ;;  %s708_s28 = scalar_lea.vmem %s707_s7, 128  ;;  %p709_p4 = scmp.lt.s32.totalorder %s964_s10, %s707_s7 }
  0x42   : > { %586 = vmatprep.subr.msk.mxu0 %vm296_vm0, %v258_v16  ;;  %280 = vperm.xlu1 %671, %v262_v18   ;;  %p705_p13 = pneg %p704_p12  ;;  %p710_p10 = scmp.lt.s32.totalorder %s708_s28, %s702_s26 }
  0x44   : > { %p711_p1 = por %p710_p10, %p709_p4 }
  0x45   : > { %587 = vmatpush1.msk.msra.mxu0 %vm296_vm0, %v257_v19  ;;  %404 = vperm.xlu0 %670, %v401_v21  }
  0x46   : > { %588 = vmatmul.mubr.msk.f32.vlgmr.msra.gmra.mrb[0].mxu0 %vm283_vm1, %v245_v20  ;;  %p712_p3 = pnand %p711_p1, %p705_p13 }
  0x47   : > { %373 = vmatprep.mubr.f32.mxu0 %v774_v0 }
  0x4a   : > { %589 = vmatmul.mubr.msk.f32.gmra.mrb[2].mxu0 %vm283_vm1, %v246_v22 }
  0x4b   : > { %379 = vmatprep.mubr.f32.mxu0 %v774_v0 }
  0x4e   : > { %590 = vmatmul.mubr.msk.f32.gmra.mrb[4].mxu0 %vm283_vm1, %v247_v23 }
  0x4f   : > { %385 = vmatprep.mubr.f32.mxu0 %v774_v0 }
  0x52   : > { %591 = vmatmul.mubr.msk.f32.gmra.mrb[6].mxu0 %vm283_vm1, %v248_v24 }
  0xbc   : > { %v266_v25 = vpop.permute.xlu0 %265 }
  0xbd   : > { %v276_v34 = vpop.permute.xlu1 %275 }
  0xc0   : > { %v271_v29 = vpop.permute.xlu0 %270 }
  0xc1   : > { %v281_v45 = vpop.permute.xlu1 %280 }
  0xc4   : > { %v405_v58 = vpop.permute.xlu0 %404 }
 0x119   : > { %v369_v26 = vpop.f32.mrb[0].mxu0 }
 0x11a   : > { %v371_v27 = vpop.f32.mrb[1].mxu0  ;;  %v370_v28 = vadd.f32 %v369_v26, %v266_v25 }
 0x11b   : > { %v372_v30 = vadd.f32 %v371_v27, %v266_v25 }
 0x11c   : > { %v392_v36 = vmax.f32 %v370_v28, 0.0 }
 0x11d   : > { %v375_v31 = vpop.f32.mrb[2].mxu0  ;;  %v393_v38 = vmax.f32 %v372_v30, 0.0 }
 0x11e   : > { %v376_v32 = vadd.f32 %v375_v31, %v271_v29  ;;  %v377_v33 = vpop.f32.mrb[3].mxu0 }
 0x11f   : > { %v378_v35 = vadd.f32 %v377_v33, %v271_v29 }
 0x120   : > { %v394_v37 = vmax.f32 %v376_v32, 0.0 }
 0x121   : > { %v395_v39 = vmax.f32 %v378_v35, 0.0  ;;  %v381_v40 = vpop.f32.mrb[4].mxu0 }
 0x122   : > { %v383_v41 = vpop.f32.mrb[5].mxu0  ;;  %v611_v42 = vpack.c.bf16 %v394_v37, %v392_v36  ;;  %v382_v44 = vadd.f32 %v381_v40, %v276_v34 }
 0x123   : > { %v609_v43 = vpack.c.bf16 %v395_v39, %v393_v38  ;;  %v384_v46 = vadd.f32 %v383_v41, %v276_v34 }
 0x124   : > { %v396_v51 = vmax.f32 %v382_v44, 0.0 }
 0x125   : > { %v387_v47 = vpop.f32.mrb[6].mxu0  ;;  %610 = vmatprep.subr.bf16.mxu1 %v609_v43  ;;  %v397_v53 = vmax.f32 %v384_v46, 0.0 }
 0x126   : > { %v388_v48 = vadd.f32 %v387_v47, %v281_v45  ;;  %v389_v49 = vpop.f32.mrb[7].mxu0  ;;  %612 = vmatpush1.bf16.msra.mxu1 %v611_v42 }
 0x127   : > { %v390_v50 = vadd.f32 %v389_v49, %v281_v45 }
 0x128   : > { %v398_v52 = vmax.f32 %v388_v48, 0.0 }
 0x129   : > { %v399_v54 = vmax.f32 %v390_v50, 0.0 }
 0x12a   : > { %v615_v55 = vpack.c.bf16 %v398_v52, %v396_v51 }
 0x12b   : > { %v613_v56 = vpack.c.bf16 %v399_v54, %v397_v53 }
 0x12d   : > { %614 = vmatprep.subr.bf16.mxu1 %v613_v56 }
 0x12e   : > { %616 = vmatpush1.bf16.msra.mxu1 %v615_v55 }
 0x131   : > { %592 = vmatmul.mubr.msk.f32.vlgmr.msra.gmra.mrb[0].mxu1 %vm407_vm2, %v400_v57 }
 0x204   : > { %v477_v59 = vpop.f32.mrb[0].mxu1 }
 0x205   : > { %v478_v60 = vadd.f32 %v477_v59, %v405_v58  ;;  %v479_v61 = vpop.f32.mrb[1].mxu1 }
 0x206   : > { %v480_v62 = vadd.f32 %v479_v61, %v405_v58 }
 0x208   : > { %v484_v63 = vcombine.low %v478_v60, %v480_v62 }
 0x20a   : > { %593 = vst.sshfl [vmem:[%s242_s9] sm:$0x33 pattern:$0x76325410] %v484_v63 }
 0x20b   : > { %715 = shalt.err (!%p712_p3)
}
 0x20c   : > { %s716_s23 = scalar_lea.hbm %s962_s17, 64  ;;  %s720_s14 = scalar_lea.hbm %s1011_s5, 128 }
 0x20d   : > { %p717_p5 = scmp.ne.s32.totalorder %s962_s17, %s716_s23  ;;  %p721_p9 = scmp.lt.u32.totalorder %s962_s17, %s1011_s5 }
 0x20e   : > { %p722_p0 = scmp.lt.u32.totalorder %s720_s14, %s716_s23  ;;  %p724_p6 = scmp.lt.u32.totalorder %s716_s23, %s962_s17 }
 0x20f   : > { %p718_p7 = pnand %p717_p5, %p1018_p11 }
 0x210   : > { %p723_p2 = por %p722_p0, %p721_p9 }
 0x211   : > { %p719_p8 = pneg %p718_p7 }
 0x212   : > { %p725_p12 = por %p724_p6, %p723_p2 }
 0x214   : > { %p726_p13 = pnand %p725_p12, %p719_p8 }
 0x216   : > { %729 = shalt.err (!%p726_p13)
}
 0x217   : > { %621 = dma.vmem_to_hbm [thread:$0]  (%p1018_p11), %s964_s10, 64, %s962_s17, %s495_s25  }
 0x218 PF: > { %s521_s8 = sand.u32 1, %s756_s18   ;;  %p1019_p4 = scmp.ne.s32.totalorder %s1015_s30, 0 }
 0x219   : > { %p1020_p10 = scmp.ge.s32.totalorder %s768_s21, 2  ;;  %s522_s9 = scalar_lea.sflag [#allocation4], %s521_s8 }
 0x21b   : > { %p628_p1 = pnand %p1020_p10, %p1019_p4 }
 0x21d   : > { %751 = dma.done.wait (!%p628_p1), %s522_s9, 64  }
 0x21e   : > { %753 = vsyncadd (!%p628_p1), %s522_s9, 4294967232  ;;  %p18_p3 = scmp.ge.s32.totalorder %s832_s24, 4   ;;  %s1021_s18 = smov %s760_s19 }
 0x21f   : > { %s1022_s19 = smov %s764_s20  ;;  %s1023_s20 = smov %s844_s27 }
 0x220   : > { %s1024_s21 = smov %s832_s24  ;;  %20 = sbr.rel (!%p18_p3) target bundleno = 5 (0x5), region = 85 }
 0x227   :  { %527 = vsyncpa [#allocation3], 1 }
 0x228   :  { %529 = vsyncpa [#allocation3 + $0x1], 1 }
 0x229   :  { %530 = vsyncpa [#allocation4], 1 }
 0x22a   :  { %532 = vsyncpa [#allocation4 + $0x1], 1 }

</bundles_post_ra>
